<compile_context>
chip_gen: v5e
topology: v5e:2x2
jax: 0.10.0
libtpu: 0.0.40
codegen_flags: <defaults>
</compile_context>

<pallas_src>
import functools

import jax
import jax.numpy as jnp
from jax.experimental import pallas as pl
from jax.experimental.pallas import tpu as pltpu


def _mock_attention_kernel(
    x_ref, wq_ref, wk_ref, wv_ref, wo_ref, out_ref, *,
    batch, seq, num_heads, num_kv_heads, head_dim, hidden,
):
    """Single-invocation fused attention.

    x_ref : (B*S, hidden)            bf16
    wq_ref: (H,   hidden, head_dim)  bf16   (scaling pre-folded)
    wk_ref: (KVH, hidden, head_dim)  bf16
    wv_ref: (KVH, hidden, head_dim)  bf16
    wo_ref: (H,   head_dim, hidden)  bf16   (= wo.T split per head)
    out_ref: (B, S*hidden)           f32    (lane-dense output slab)
    """
    bf16 = jnp.bfloat16
    groups = num_heads // num_kv_heads

    def mm(a, b):
        # plain (M, K) @ (K, N) on the MXU, f32 accumulation
        return jax.lax.dot_general(
            a, b, (((1,), (0,)), ((), ())),
            preferred_element_type=jnp.float32)

    x = x_ref[...]                                    # (B*S, hidden) bf16

    # One f32 accumulator per batch row-group; per-head contributions are
    # accumulated directly (no head_outs concat, no big final o_proj).
    accs = [jnp.zeros((seq, hidden), jnp.float32) for _ in range(batch)]

    for kv in range(num_kv_heads):
        # K/V projections for this kv head, shared by `groups` query heads.
        k_h = mm(x, wk_ref[kv])                       # (B*S, Dh) f32
        v_h = mm(x, wv_ref[kv])                       # (B*S, Dh) f32
        for g in range(groups):
            h = kv * groups + g
            q_h = mm(x, wq_ref[h])                    # (B*S, Dh) f32, pre-scaled
            for b in range(batch):
                sl = slice(b * seq, (b + 1) * seq)    # static, 8-row aligned
                qb = q_h[sl].astype(bf16)
                kb = k_h[sl].astype(bf16)
                vb = v_h[sl].astype(bf16)

                # scores = q @ k^T (scaling already folded into wq); softmax
                # in f32 to match the torch reference path.
                s = jax.lax.dot_general(
                    qb, kb, (((1,), (1,)), ((), ())),
                    preferred_element_type=jnp.float32)          # (S, S)
                s = s - jnp.max(s, axis=-1, keepdims=True)
                p = jnp.exp(s)
                p = p * pl.reciprocal(jnp.sum(p, axis=-1, keepdims=True),
                                      approx=True)

                o_b = mm(p.astype(bf16), vb).astype(bf16)        # (S, Dh)
                # per-head output projection slice, accumulated in f32
                accs[b] = accs[b] + mm(o_b, wo_ref[h])           # (S, hidden)

    # Lane-dense store: pack each batch's (S, hidden) result into one
    # (1, S*hidden) row via static slice + lane concat (row-major order is
    # identical to the (B, S, hidden) layout, so the wrapper reshape is free).
    rows = []
    for b in range(batch):
        pieces = [accs[b][i:i + 1, :] for i in range(seq)]
        rows.append(jnp.concatenate(pieces, axis=-1))            # (1, S*hidden)
    out_ref[...] = jnp.concatenate(rows, axis=0).astype(out_ref.dtype)


def mock_attention_forward(hidden_states, wq, wk, wv, wo,
                           *, num_heads, num_kv_heads):
    """Equivalent of MockAttention.forward.

    hidden_states: (B, S, hidden) f32
    wq: (H*Dh, hidden), wk/wv: (KVH*Dh, hidden), wo: (hidden, H*Dh)
    (PyTorch nn.Linear convention: y = x @ W.T, no bias.)
    """
    batch, seq, hidden = hidden_states.shape
    head_dim = hidden // num_heads
    scaling = float(head_dim) ** -0.5
    cdt = jnp.bfloat16

    # --- one-time weight prep (would be cached for a real module) ----------
    #  * fold the 1/sqrt(Dh) score scaling into wq
    #  * pre-transpose so in-kernel matmuls contract (lhs -1, rhs 0)
    #  * split the head axis out as a leading dim -> per-head weight slices
    #    are clean leading-axis loads (no sub-128-lane slicing in the kernel)
    wq_p = jnp.transpose((wq * scaling).reshape(num_heads, head_dim, hidden),
                         (0, 2, 1)).astype(cdt)            # (H, hidden, Dh)
    wk_p = jnp.transpose(wk.reshape(num_kv_heads, head_dim, hidden),
                         (0, 2, 1)).astype(cdt)            # (KVH, hidden, Dh)
    wv_p = jnp.transpose(wv.reshape(num_kv_heads, head_dim, hidden),
                         (0, 2, 1)).astype(cdt)            # (KVH, hidden, Dh)
    wo_p = wo.T.reshape(num_heads, head_dim, hidden).astype(cdt)  # (H, Dh, hidden)

    # Flatten batch*seq rows for better MXU M-fill; bf16 halves the input DMA.
    x_p = hidden_states.reshape(batch * seq, hidden).astype(cdt)

    kernel = functools.partial(
        _mock_attention_kernel,
        batch=batch, seq=seq, num_heads=num_heads,
        num_kv_heads=num_kv_heads, head_dim=head_dim, hidden=hidden,
    )

    vmem = pl.BlockSpec(memory_space=pltpu.MemorySpace.VMEM)
    out_flat = pl.pallas_call(
        kernel,
        out_shape=jax.ShapeDtypeStruct((batch, seq * hidden),
                                       hidden_states.dtype),
        in_specs=[vmem] * 5,
        out_specs=vmem,
    )(x_p, wq_p, wk_p, wv_p, wo_p)

    # Row-major (B, S*hidden) == (B, S, hidden): free view in HBM.
    return out_flat.reshape(batch, seq, hidden)


def _torch_linear_init(key, out_features, in_features):
    """Deterministic init mimicking torch.nn.Linear default
    (kaiming-uniform -> U(-1/sqrt(in), 1/sqrt(in)))."""
    bound = 1.0 / (float(in_features) ** 0.5)
    return jax.random.uniform(
        key, (out_features, in_features), jnp.float32, -bound, bound)


def _reference_forward(x, wq, wk, wv, wo, num_heads, num_kv_heads):
    """Pure-JAX f32 reference mirroring the PyTorch module."""
    batch, seq, hidden = x.shape
    head_dim = hidden // num_heads
    groups = num_heads // num_kv_heads
    scaling = float(head_dim) ** -0.5

    q = (x @ wq.T).reshape(batch, seq, num_heads, head_dim).transpose(0, 2, 1, 3)
    k = (x @ wk.T).reshape(batch, seq, num_kv_heads, head_dim).transpose(0, 2, 1, 3)
    v = (x @ wv.T).reshape(batch, seq, num_kv_heads, head_dim).transpose(0, 2, 1, 3)
    k = jnp.repeat(k, groups, axis=1)
    v = jnp.repeat(v, groups, axis=1)

    s = jnp.einsum("bhqd,bhkd->bhqk", q, k) * scaling
    p = jax.nn.softmax(s.astype(jnp.float32), axis=-1).astype(q.dtype)
    o = jnp.einsum("bhqk,bhkd->bhqd", p, v)
    o = o.transpose(0, 2, 1, 3).reshape(batch, seq, num_heads * head_dim)
    return o @ wo.T


if __name__ == "__main__":
    # MockAttention(hidden_size=32, num_attention_heads=4, num_key_value_heads=2)
    hidden_size = 32
    num_heads = 4
    num_kv_heads = 2
    head_dim = hidden_size // num_heads
    batch = 2
    seq = 8

    key = jax.random.PRNGKey(0)
    kx, kq, kk, kv_, ko = jax.random.split(key, 5)

    x = jax.random.normal(kx, (batch, seq, hidden_size), jnp.float32)
    wq = _torch_linear_init(kq, num_heads * head_dim, hidden_size)
    wk = _torch_linear_init(kk, num_kv_heads * head_dim, hidden_size)
    wv = _torch_linear_init(kv_, num_kv_heads * head_dim, hidden_size)
    wo = _torch_linear_init(ko, hidden_size, num_heads * head_dim)

    out = mock_attention_forward(
        x, wq, wk, wv, wo, num_heads=num_heads, num_kv_heads=num_kv_heads)
    out = jax.block_until_ready(out)

    ref = _reference_forward(x, wq, wk, wv, wo, num_heads, num_kv_heads)
    assert out.shape == (batch, seq, hidden_size), out.shape
    # bf16 MXU operands + approx reciprocal -> slightly looser tolerance than
    # the pure-f32 path.
    assert jnp.allclose(out, ref, atol=3e-2, rtol=3e-2), float(
        jnp.max(jnp.abs(out - ref)))

    print("KERNEL_OK")
</pallas_src>

<mosaic_0001>
module attributes {stable_mosaic.version = 11 : i64} {
  func.func @_mock_attention_kernel(%arg0: memref<16x32xbf16, #tpu.memory_space<vmem>>, %arg1: memref<4x32x8xbf16, #tpu.memory_space<vmem>>, %arg2: memref<2x32x8xbf16, #tpu.memory_space<vmem>>, %arg3: memref<2x32x8xbf16, #tpu.memory_space<vmem>>, %arg4: memref<4x8x32xbf16, #tpu.memory_space<vmem>>, %arg5: memref<2x256xf32, #tpu.memory_space<vmem>>) attributes {dimension_semantics = [], scalar_prefetch = 0 : i64, scratch_operands = 0 : i64, tpu.core_type = #tpu.core_type<tc>} {
    %c0 = arith.constant 0 : index
    %c0_0 = arith.constant 0 : index
    %0 = vector.load %arg0[%c0, %c0_0] : memref<16x32xbf16, #tpu.memory_space<vmem>>, vector<16x32xbf16>
    %cst = arith.constant 0.000000e+00 : f32
    %1 = vector.broadcast %cst : f32 to vector<8x32xf32>
    %cst_1 = arith.constant 0.000000e+00 : f32
    %2 = vector.broadcast %cst_1 : f32 to vector<8x32xf32>
    %c0_2 = arith.constant 0 : index
    %c0_3 = arith.constant 0 : index
    %c0_4 = arith.constant 0 : index
    %3 = vector.load %arg2[%c0_2, %c0_3, %c0_4] : memref<2x32x8xbf16, #tpu.memory_space<vmem>>, vector<1x32x8xbf16>
    %4 = vector.shape_cast %3 : vector<1x32x8xbf16> to vector<32x8xbf16>
    %cst_5 = arith.constant dense<0.000000e+00> : vector<16x8xf32>
    %5 = tpu.matmul %0, %4, %cst_5 {dimension_numbers = #tpu.dot_dimension_numbers<[1], [0], [0], [1], [0, 0, 1, 1], [], []>} : vector<16x32xbf16>, vector<32x8xbf16>, vector<16x8xf32> -> vector<16x8xf32>
    %c0_6 = arith.constant 0 : index
    %c0_7 = arith.constant 0 : index
    %c0_8 = arith.constant 0 : index
    %6 = vector.load %arg3[%c0_6, %c0_7, %c0_8] : memref<2x32x8xbf16, #tpu.memory_space<vmem>>, vector<1x32x8xbf16>
    %7 = vector.shape_cast %6 : vector<1x32x8xbf16> to vector<32x8xbf16>
    %cst_9 = arith.constant dense<0.000000e+00> : vector<16x8xf32>
    %8 = tpu.matmul %0, %7, %cst_9 {dimension_numbers = #tpu.dot_dimension_numbers<[1], [0], [0], [1], [0, 0, 1, 1], [], []>} : vector<16x32xbf16>, vector<32x8xbf16>, vector<16x8xf32> -> vector<16x8xf32>
    %c0_10 = arith.constant 0 : index
    %c0_11 = arith.constant 0 : index
    %c0_12 = arith.constant 0 : index
    %9 = vector.load %arg1[%c0_10, %c0_11, %c0_12] : memref<4x32x8xbf16, #tpu.memory_space<vmem>>, vector<1x32x8xbf16>
    %10 = vector.shape_cast %9 : vector<1x32x8xbf16> to vector<32x8xbf16>
    %cst_13 = arith.constant dense<0.000000e+00> : vector<16x8xf32>
    %11 = tpu.matmul %0, %10, %cst_13 {dimension_numbers = #tpu.dot_dimension_numbers<[1], [0], [0], [1], [0, 0, 1, 1], [], []>} : vector<16x32xbf16>, vector<32x8xbf16>, vector<16x8xf32> -> vector<16x8xf32>
    %12 = vector.extract_strided_slice %11 {offsets = [0, 0], sizes = [8, 8], strides = [1, 1]} : vector<16x8xf32> to vector<8x8xf32>
    %13 = arith.truncf %12 : vector<8x8xf32> to vector<8x8xbf16>
    %14 = vector.extract_strided_slice %5 {offsets = [0, 0], sizes = [8, 8], strides = [1, 1]} : vector<16x8xf32> to vector<8x8xf32>
    %15 = arith.truncf %14 : vector<8x8xf32> to vector<8x8xbf16>
    %16 = vector.extract_strided_slice %8 {offsets = [0, 0], sizes = [8, 8], strides = [1, 1]} : vector<16x8xf32> to vector<8x8xf32>
    %17 = arith.truncf %16 : vector<8x8xf32> to vector<8x8xbf16>
    %cst_14 = arith.constant dense<0.000000e+00> : vector<8x8xf32>
    %18 = tpu.matmul %13, %15, %cst_14 {dimension_numbers = #tpu.dot_dimension_numbers<[1], [1], [0], [0], [0, 0, 1, 0], [], []>} : vector<8x8xbf16>, vector<8x8xbf16>, vector<8x8xf32> -> vector<8x8xf32>
    %cst_15 = arith.constant dense<0xFF800000> : vector<8xf32>
    %19 = vector.multi_reduction <maximumf>, %18, %cst_15 [1] : vector<8x8xf32> to vector<8xf32>
    %20 = vector.shape_cast %19 : vector<8xf32> to vector<8x1xf32>
    %21 = vector.broadcast %20 : vector<8x1xf32> to vector<8x8xf32>
    %22 = arith.subf %18, %21 : vector<8x8xf32>
    %23 = math.exp %22 : vector<8x8xf32>
    %cst_16 = arith.constant dense<0.000000e+00> : vector<8xf32>
    %24 = vector.multi_reduction <add>, %23, %cst_16 [1] : vector<8x8xf32> to vector<8xf32>
    %25 = vector.shape_cast %24 : vector<8xf32> to vector<8x1xf32>
    %26 = tpu.reciprocal %25 {approx = true} : vector<8x1xf32> -> vector<8x1xf32>
    %27 = vector.broadcast %26 : vector<8x1xf32> to vector<8x8xf32>
    %28 = arith.mulf %23, %27 : vector<8x8xf32>
    %29 = arith.truncf %28 : vector<8x8xf32> to vector<8x8xbf16>
    %cst_17 = arith.constant dense<0.000000e+00> : vector<8x8xf32>
    %30 = tpu.matmul %29, %17, %cst_17 {dimension_numbers = #tpu.dot_dimension_numbers<[1], [0], [0], [1], [0, 0, 1, 1], [], []>} : vector<8x8xbf16>, vector<8x8xbf16>, vector<8x8xf32> -> vector<8x8xf32>
    %31 = arith.truncf %30 : vector<8x8xf32> to vector<8x8xbf16>
    %c0_18 = arith.constant 0 : index
    %c0_19 = arith.constant 0 : index
    %c0_20 = arith.constant 0 : index
    %32 = vector.load %arg4[%c0_18, %c0_19, %c0_20] : memref<4x8x32xbf16, #tpu.memory_space<vmem>>, vector<1x8x32xbf16>
    %33 = vector.shape_cast %32 : vector<1x8x32xbf16> to vector<8x32xbf16>
    %cst_21 = arith.constant dense<0.000000e+00> : vector<8x32xf32>
    %34 = tpu.matmul %31, %33, %cst_21 {dimension_numbers = #tpu.dot_dimension_numbers<[1], [0], [0], [1], [0, 0, 1, 1], [], []>} : vector<8x8xbf16>, vector<8x32xbf16>, vector<8x32xf32> -> vector<8x32xf32>
    %35 = arith.addf %1, %34 : vector<8x32xf32>
    %36 = vector.extract_strided_slice %11 {offsets = [8, 0], sizes = [8, 8], strides = [1, 1]} : vector<16x8xf32> to vector<8x8xf32>
    %37 = arith.truncf %36 : vector<8x8xf32> to vector<8x8xbf16>
    %38 = vector.extract_strided_slice %5 {offsets = [8, 0], sizes = [8, 8], strides = [1, 1]} : vector<16x8xf32> to vector<8x8xf32>
    %39 = arith.truncf %38 : vector<8x8xf32> to vector<8x8xbf16>
    %40 = vector.extract_strided_slice %8 {offsets = [8, 0], sizes = [8, 8], strides = [1, 1]} : vector<16x8xf32> to vector<8x8xf32>
    %41 = arith.truncf %40 : vector<8x8xf32> to vector<8x8xbf16>
    %cst_22 = arith.constant dense<0.000000e+00> : vector<8x8xf32>
    %42 = tpu.matmul %37, %39, %cst_22 {dimension_numbers = #tpu.dot_dimension_numbers<[1], [1], [0], [0], [0, 0, 1, 0], [], []>} : vector<8x8xbf16>, vector<8x8xbf16>, vector<8x8xf32> -> vector<8x8xf32>
    %cst_23 = arith.constant dense<0xFF800000> : vector<8xf32>
    %43 = vector.multi_reduction <maximumf>, %42, %cst_23 [1] : vector<8x8xf32> to vector<8xf32>
    %44 = vector.shape_cast %43 : vector<8xf32> to vector<8x1xf32>
    %45 = vector.broadcast %44 : vector<8x1xf32> to vector<8x8xf32>
    %46 = arith.subf %42, %45 : vector<8x8xf32>
    %47 = math.exp %46 : vector<8x8xf32>
    %cst_24 = arith.constant dense<0.000000e+00> : vector<8xf32>
    %48 = vector.multi_reduction <add>, %47, %cst_24 [1] : vector<8x8xf32> to vector<8xf32>
    %49 = vector.shape_cast %48 : vector<8xf32> to vector<8x1xf32>
    %50 = tpu.reciprocal %49 {approx = true} : vector<8x1xf32> -> vector<8x1xf32>
    %51 = vector.broadcast %50 : vector<8x1xf32> to vector<8x8xf32>
    %52 = arith.mulf %47, %51 : vector<8x8xf32>
    %53 = arith.truncf %52 : vector<8x8xf32> to vector<8x8xbf16>
    %cst_25 = arith.constant dense<0.000000e+00> : vector<8x8xf32>
    %54 = tpu.matmul %53, %41, %cst_25 {dimension_numbers = #tpu.dot_dimension_numbers<[1], [0], [0], [1], [0, 0, 1, 1], [], []>} : vector<8x8xbf16>, vector<8x8xbf16>, vector<8x8xf32> -> vector<8x8xf32>
    %55 = arith.truncf %54 : vector<8x8xf32> to vector<8x8xbf16>
    %c0_26 = arith.constant 0 : index
    %c0_27 = arith.constant 0 : index
    %c0_28 = arith.constant 0 : index
    %56 = vector.load %arg4[%c0_26, %c0_27, %c0_28] : memref<4x8x32xbf16, #tpu.memory_space<vmem>>, vector<1x8x32xbf16>
    %57 = vector.shape_cast %56 : vector<1x8x32xbf16> to vector<8x32xbf16>
    %cst_29 = arith.constant dense<0.000000e+00> : vector<8x32xf32>
    %58 = tpu.matmul %55, %57, %cst_29 {dimension_numbers = #tpu.dot_dimension_numbers<[1], [0], [0], [1], [0, 0, 1, 1], [], []>} : vector<8x8xbf16>, vector<8x32xbf16>, vector<8x32xf32> -> vector<8x32xf32>
    %59 = arith.addf %2, %58 : vector<8x32xf32>
    %c1 = arith.constant 1 : index
    %c0_30 = arith.constant 0 : index
    %c0_31 = arith.constant 0 : index
    %60 = vector.load %arg1[%c1, %c0_30, %c0_31] : memref<4x32x8xbf16, #tpu.memory_space<vmem>>, vector<1x32x8xbf16>
    %61 = vector.shape_cast %60 : vector<1x32x8xbf16> to vector<32x8xbf16>
    %cst_32 = arith.constant dense<0.000000e+00> : vector<16x8xf32>
    %62 = tpu.matmul %0, %61, %cst_32 {dimension_numbers = #tpu.dot_dimension_numbers<[1], [0], [0], [1], [0, 0, 1, 1], [], []>} : vector<16x32xbf16>, vector<32x8xbf16>, vector<16x8xf32> -> vector<16x8xf32>
    %63 = vector.extract_strided_slice %62 {offsets = [0, 0], sizes = [8, 8], strides = [1, 1]} : vector<16x8xf32> to vector<8x8xf32>
    %64 = arith.truncf %63 : vector<8x8xf32> to vector<8x8xbf16>
    %65 = vector.extract_strided_slice %5 {offsets = [0, 0], sizes = [8, 8], strides = [1, 1]} : vector<16x8xf32> to vector<8x8xf32>
    %66 = arith.truncf %65 : vector<8x8xf32> to vector<8x8xbf16>
    %67 = vector.extract_strided_slice %8 {offsets = [0, 0], sizes = [8, 8], strides = [1, 1]} : vector<16x8xf32> to vector<8x8xf32>
    %68 = arith.truncf %67 : vector<8x8xf32> to vector<8x8xbf16>
    %cst_33 = arith.constant dense<0.000000e+00> : vector<8x8xf32>
    %69 = tpu.matmul %64, %66, %cst_33 {dimension_numbers = #tpu.dot_dimension_numbers<[1], [1], [0], [0], [0, 0, 1, 0], [], []>} : vector<8x8xbf16>, vector<8x8xbf16>, vector<8x8xf32> -> vector<8x8xf32>
    %cst_34 = arith.constant dense<0xFF800000> : vector<8xf32>
    %70 = vector.multi_reduction <maximumf>, %69, %cst_34 [1] : vector<8x8xf32> to vector<8xf32>
    %71 = vector.shape_cast %70 : vector<8xf32> to vector<8x1xf32>
    %72 = vector.broadcast %71 : vector<8x1xf32> to vector<8x8xf32>
    %73 = arith.subf %69, %72 : vector<8x8xf32>
    %74 = math.exp %73 : vector<8x8xf32>
    %cst_35 = arith.constant dense<0.000000e+00> : vector<8xf32>
    %75 = vector.multi_reduction <add>, %74, %cst_35 [1] : vector<8x8xf32> to vector<8xf32>
    %76 = vector.shape_cast %75 : vector<8xf32> to vector<8x1xf32>
    %77 = tpu.reciprocal %76 {approx = true} : vector<8x1xf32> -> vector<8x1xf32>
    %78 = vector.broadcast %77 : vector<8x1xf32> to vector<8x8xf32>
    %79 = arith.mulf %74, %78 : vector<8x8xf32>
    %80 = arith.truncf %79 : vector<8x8xf32> to vector<8x8xbf16>
    %cst_36 = arith.constant dense<0.000000e+00> : vector<8x8xf32>
    %81 = tpu.matmul %80, %68, %cst_36 {dimension_numbers = #tpu.dot_dimension_numbers<[1], [0], [0], [1], [0, 0, 1, 1], [], []>} : vector<8x8xbf16>, vector<8x8xbf16>, vector<8x8xf32> -> vector<8x8xf32>
    %82 = arith.truncf %81 : vector<8x8xf32> to vector<8x8xbf16>
    %c1_37 = arith.constant 1 : index
    %c0_38 = arith.constant 0 : index
    %c0_39 = arith.constant 0 : index
    %83 = vector.load %arg4[%c1_37, %c0_38, %c0_39] : memref<4x8x32xbf16, #tpu.memory_space<vmem>>, vector<1x8x32xbf16>
    %84 = vector.shape_cast %83 : vector<1x8x32xbf16> to vector<8x32xbf16>
    %cst_40 = arith.constant dense<0.000000e+00> : vector<8x32xf32>
    %85 = tpu.matmul %82, %84, %cst_40 {dimension_numbers = #tpu.dot_dimension_numbers<[1], [0], [0], [1], [0, 0, 1, 1], [], []>} : vector<8x8xbf16>, vector<8x32xbf16>, vector<8x32xf32> -> vector<8x32xf32>
    %86 = arith.addf %35, %85 : vector<8x32xf32>
    %87 = vector.extract_strided_slice %62 {offsets = [8, 0], sizes = [8, 8], strides = [1, 1]} : vector<16x8xf32> to vector<8x8xf32>
    %88 = arith.truncf %87 : vector<8x8xf32> to vector<8x8xbf16>
    %89 = vector.extract_strided_slice %5 {offsets = [8, 0], sizes = [8, 8], strides = [1, 1]} : vector<16x8xf32> to vector<8x8xf32>
    %90 = arith.truncf %89 : vector<8x8xf32> to vector<8x8xbf16>
    %91 = vector.extract_strided_slice %8 {offsets = [8, 0], sizes = [8, 8], strides = [1, 1]} : vector<16x8xf32> to vector<8x8xf32>
    %92 = arith.truncf %91 : vector<8x8xf32> to vector<8x8xbf16>
    %cst_41 = arith.constant dense<0.000000e+00> : vector<8x8xf32>
    %93 = tpu.matmul %88, %90, %cst_41 {dimension_numbers = #tpu.dot_dimension_numbers<[1], [1], [0], [0], [0, 0, 1, 0], [], []>} : vector<8x8xbf16>, vector<8x8xbf16>, vector<8x8xf32> -> vector<8x8xf32>
    %cst_42 = arith.constant dense<0xFF800000> : vector<8xf32>
    %94 = vector.multi_reduction <maximumf>, %93, %cst_42 [1] : vector<8x8xf32> to vector<8xf32>
    %95 = vector.shape_cast %94 : vector<8xf32> to vector<8x1xf32>
    %96 = vector.broadcast %95 : vector<8x1xf32> to vector<8x8xf32>
    %97 = arith.subf %93, %96 : vector<8x8xf32>
    %98 = math.exp %97 : vector<8x8xf32>
    %cst_43 = arith.constant dense<0.000000e+00> : vector<8xf32>
    %99 = vector.multi_reduction <add>, %98, %cst_43 [1] : vector<8x8xf32> to vector<8xf32>
    %100 = vector.shape_cast %99 : vector<8xf32> to vector<8x1xf32>
    %101 = tpu.reciprocal %100 {approx = true} : vector<8x1xf32> -> vector<8x1xf32>
    %102 = vector.broadcast %101 : vector<8x1xf32> to vector<8x8xf32>
    %103 = arith.mulf %98, %102 : vector<8x8xf32>
    %104 = arith.truncf %103 : vector<8x8xf32> to vector<8x8xbf16>
    %cst_44 = arith.constant dense<0.000000e+00> : vector<8x8xf32>
    %105 = tpu.matmul %104, %92, %cst_44 {dimension_numbers = #tpu.dot_dimension_numbers<[1], [0], [0], [1], [0, 0, 1, 1], [], []>} : vector<8x8xbf16>, vector<8x8xbf16>, vector<8x8xf32> -> vector<8x8xf32>
    %106 = arith.truncf %105 : vector<8x8xf32> to vector<8x8xbf16>
    %c1_45 = arith.constant 1 : index
    %c0_46 = arith.constant 0 : index
    %c0_47 = arith.constant 0 : index
    %107 = vector.load %arg4[%c1_45, %c0_46, %c0_47] : memref<4x8x32xbf16, #tpu.memory_space<vmem>>, vector<1x8x32xbf16>
    %108 = vector.shape_cast %107 : vector<1x8x32xbf16> to vector<8x32xbf16>
    %cst_48 = arith.constant dense<0.000000e+00> : vector<8x32xf32>
    %109 = tpu.matmul %106, %108, %cst_48 {dimension_numbers = #tpu.dot_dimension_numbers<[1], [0], [0], [1], [0, 0, 1, 1], [], []>} : vector<8x8xbf16>, vector<8x32xbf16>, vector<8x32xf32> -> vector<8x32xf32>
    %110 = arith.addf %59, %109 : vector<8x32xf32>
    %c1_49 = arith.constant 1 : index
    %c0_50 = arith.constant 0 : index
    %c0_51 = arith.constant 0 : index
    %111 = vector.load %arg2[%c1_49, %c0_50, %c0_51] : memref<2x32x8xbf16, #tpu.memory_space<vmem>>, vector<1x32x8xbf16>
    %112 = vector.shape_cast %111 : vector<1x32x8xbf16> to vector<32x8xbf16>
    %cst_52 = arith.constant dense<0.000000e+00> : vector<16x8xf32>
    %113 = tpu.matmul %0, %112, %cst_52 {dimension_numbers = #tpu.dot_dimension_numbers<[1], [0], [0], [1], [0, 0, 1, 1], [], []>} : vector<16x32xbf16>, vector<32x8xbf16>, vector<16x8xf32> -> vector<16x8xf32>
    %c1_53 = arith.constant 1 : index
    %c0_54 = arith.constant 0 : index
    %c0_55 = arith.constant 0 : index
    %114 = vector.load %arg3[%c1_53, %c0_54, %c0_55] : memref<2x32x8xbf16, #tpu.memory_space<vmem>>, vector<1x32x8xbf16>
    %115 = vector.shape_cast %114 : vector<1x32x8xbf16> to vector<32x8xbf16>
    %cst_56 = arith.constant dense<0.000000e+00> : vector<16x8xf32>
    %116 = tpu.matmul %0, %115, %cst_56 {dimension_numbers = #tpu.dot_dimension_numbers<[1], [0], [0], [1], [0, 0, 1, 1], [], []>} : vector<16x32xbf16>, vector<32x8xbf16>, vector<16x8xf32> -> vector<16x8xf32>
    %c2 = arith.constant 2 : index
    %c0_57 = arith.constant 0 : index
    %c0_58 = arith.constant 0 : index
    %117 = vector.load %arg1[%c2, %c0_57, %c0_58] : memref<4x32x8xbf16, #tpu.memory_space<vmem>>, vector<1x32x8xbf16>
    %118 = vector.shape_cast %117 : vector<1x32x8xbf16> to vector<32x8xbf16>
    %cst_59 = arith.constant dense<0.000000e+00> : vector<16x8xf32>
    %119 = tpu.matmul %0, %118, %cst_59 {dimension_numbers = #tpu.dot_dimension_numbers<[1], [0], [0], [1], [0, 0, 1, 1], [], []>} : vector<16x32xbf16>, vector<32x8xbf16>, vector<16x8xf32> -> vector<16x8xf32>
    %120 = vector.extract_strided_slice %119 {offsets = [0, 0], sizes = [8, 8], strides = [1, 1]} : vector<16x8xf32> to vector<8x8xf32>
    %121 = arith.truncf %120 : vector<8x8xf32> to vector<8x8xbf16>
    %122 = vector.extract_strided_slice %113 {offsets = [0, 0], sizes = [8, 8], strides = [1, 1]} : vector<16x8xf32> to vector<8x8xf32>
    %123 = arith.truncf %122 : vector<8x8xf32> to vector<8x8xbf16>
    %124 = vector.extract_strided_slice %116 {offsets = [0, 0], sizes = [8, 8], strides = [1, 1]} : vector<16x8xf32> to vector<8x8xf32>
    %125 = arith.truncf %124 : vector<8x8xf32> to vector<8x8xbf16>
    %cst_60 = arith.constant dense<0.000000e+00> : vector<8x8xf32>
    %126 = tpu.matmul %121, %123, %cst_60 {dimension_numbers = #tpu.dot_dimension_numbers<[1], [1], [0], [0], [0, 0, 1, 0], [], []>} : vector<8x8xbf16>, vector<8x8xbf16>, vector<8x8xf32> -> vector<8x8xf32>
    %cst_61 = arith.constant dense<0xFF800000> : vector<8xf32>
    %127 = vector.multi_reduction <maximumf>, %126, %cst_61 [1] : vector<8x8xf32> to vector<8xf32>
    %128 = vector.shape_cast %127 : vector<8xf32> to vector<8x1xf32>
    %129 = vector.broadcast %128 : vector<8x1xf32> to vector<8x8xf32>
    %130 = arith.subf %126, %129 : vector<8x8xf32>
    %131 = math.exp %130 : vector<8x8xf32>
    %cst_62 = arith.constant dense<0.000000e+00> : vector<8xf32>
    %132 = vector.multi_reduction <add>, %131, %cst_62 [1] : vector<8x8xf32> to vector<8xf32>
    %133 = vector.shape_cast %132 : vector<8xf32> to vector<8x1xf32>
    %134 = tpu.reciprocal %133 {approx = true} : vector<8x1xf32> -> vector<8x1xf32>
    %135 = vector.broadcast %134 : vector<8x1xf32> to vector<8x8xf32>
    %136 = arith.mulf %131, %135 : vector<8x8xf32>
    %137 = arith.truncf %136 : vector<8x8xf32> to vector<8x8xbf16>
    %cst_63 = arith.constant dense<0.000000e+00> : vector<8x8xf32>
    %138 = tpu.matmul %137, %125, %cst_63 {dimension_numbers = #tpu.dot_dimension_numbers<[1], [0], [0], [1], [0, 0, 1, 1], [], []>} : vector<8x8xbf16>, vector<8x8xbf16>, vector<8x8xf32> -> vector<8x8xf32>
    %139 = arith.truncf %138 : vector<8x8xf32> to vector<8x8xbf16>
    %c2_64 = arith.constant 2 : index
    %c0_65 = arith.constant 0 : index
    %c0_66 = arith.constant 0 : index
    %140 = vector.load %arg4[%c2_64, %c0_65, %c0_66] : memref<4x8x32xbf16, #tpu.memory_space<vmem>>, vector<1x8x32xbf16>
    %141 = vector.shape_cast %140 : vector<1x8x32xbf16> to vector<8x32xbf16>
    %cst_67 = arith.constant dense<0.000000e+00> : vector<8x32xf32>
    %142 = tpu.matmul %139, %141, %cst_67 {dimension_numbers = #tpu.dot_dimension_numbers<[1], [0], [0], [1], [0, 0, 1, 1], [], []>} : vector<8x8xbf16>, vector<8x32xbf16>, vector<8x32xf32> -> vector<8x32xf32>
    %143 = arith.addf %86, %142 : vector<8x32xf32>
    %144 = vector.extract_strided_slice %119 {offsets = [8, 0], sizes = [8, 8], strides = [1, 1]} : vector<16x8xf32> to vector<8x8xf32>
    %145 = arith.truncf %144 : vector<8x8xf32> to vector<8x8xbf16>
    %146 = vector.extract_strided_slice %113 {offsets = [8, 0], sizes = [8, 8], strides = [1, 1]} : vector<16x8xf32> to vector<8x8xf32>
    %147 = arith.truncf %146 : vector<8x8xf32> to vector<8x8xbf16>
    %148 = vector.extract_strided_slice %116 {offsets = [8, 0], sizes = [8, 8], strides = [1, 1]} : vector<16x8xf32> to vector<8x8xf32>
    %149 = arith.truncf %148 : vector<8x8xf32> to vector<8x8xbf16>
    %cst_68 = arith.constant dense<0.000000e+00> : vector<8x8xf32>
    %150 = tpu.matmul %145, %147, %cst_68 {dimension_numbers = #tpu.dot_dimension_numbers<[1], [1], [0], [0], [0, 0, 1, 0], [], []>} : vector<8x8xbf16>, vector<8x8xbf16>, vector<8x8xf32> -> vector<8x8xf32>
    %cst_69 = arith.constant dense<0xFF800000> : vector<8xf32>
    %151 = vector.multi_reduction <maximumf>, %150, %cst_69 [1] : vector<8x8xf32> to vector<8xf32>
    %152 = vector.shape_cast %151 : vector<8xf32> to vector<8x1xf32>
    %153 = vector.broadcast %152 : vector<8x1xf32> to vector<8x8xf32>
    %154 = arith.subf %150, %153 : vector<8x8xf32>
    %155 = math.exp %154 : vector<8x8xf32>
    %cst_70 = arith.constant dense<0.000000e+00> : vector<8xf32>
    %156 = vector.multi_reduction <add>, %155, %cst_70 [1] : vector<8x8xf32> to vector<8xf32>
    %157 = vector.shape_cast %156 : vector<8xf32> to vector<8x1xf32>
    %158 = tpu.reciprocal %157 {approx = true} : vector<8x1xf32> -> vector<8x1xf32>
    %159 = vector.broadcast %158 : vector<8x1xf32> to vector<8x8xf32>
    %160 = arith.mulf %155, %159 : vector<8x8xf32>
    %161 = arith.truncf %160 : vector<8x8xf32> to vector<8x8xbf16>
    %cst_71 = arith.constant dense<0.000000e+00> : vector<8x8xf32>
    %162 = tpu.matmul %161, %149, %cst_71 {dimension_numbers = #tpu.dot_dimension_numbers<[1], [0], [0], [1], [0, 0, 1, 1], [], []>} : vector<8x8xbf16>, vector<8x8xbf16>, vector<8x8xf32> -> vector<8x8xf32>
    %163 = arith.truncf %162 : vector<8x8xf32> to vector<8x8xbf16>
    %c2_72 = arith.constant 2 : index
    %c0_73 = arith.constant 0 : index
    %c0_74 = arith.constant 0 : index
    %164 = vector.load %arg4[%c2_72, %c0_73, %c0_74] : memref<4x8x32xbf16, #tpu.memory_space<vmem>>, vector<1x8x32xbf16>
    %165 = vector.shape_cast %164 : vector<1x8x32xbf16> to vector<8x32xbf16>
    %cst_75 = arith.constant dense<0.000000e+00> : vector<8x32xf32>
    %166 = tpu.matmul %163, %165, %cst_75 {dimension_numbers = #tpu.dot_dimension_numbers<[1], [0], [0], [1], [0, 0, 1, 1], [], []>} : vector<8x8xbf16>, vector<8x32xbf16>, vector<8x32xf32> -> vector<8x32xf32>
    %167 = arith.addf %110, %166 : vector<8x32xf32>
    %c3 = arith.constant 3 : index
    %c0_76 = arith.constant 0 : index
    %c0_77 = arith.constant 0 : index
    %168 = vector.load %arg1[%c3, %c0_76, %c0_77] : memref<4x32x8xbf16, #tpu.memory_space<vmem>>, vector<1x32x8xbf16>
    %169 = vector.shape_cast %168 : vector<1x32x8xbf16> to vector<32x8xbf16>
    %cst_78 = arith.constant dense<0.000000e+00> : vector<16x8xf32>
    %170 = tpu.matmul %0, %169, %cst_78 {dimension_numbers = #tpu.dot_dimension_numbers<[1], [0], [0], [1], [0, 0, 1, 1], [], []>} : vector<16x32xbf16>, vector<32x8xbf16>, vector<16x8xf32> -> vector<16x8xf32>
    %171 = vector.extract_strided_slice %170 {offsets = [0, 0], sizes = [8, 8], strides = [1, 1]} : vector<16x8xf32> to vector<8x8xf32>
    %172 = arith.truncf %171 : vector<8x8xf32> to vector<8x8xbf16>
    %173 = vector.extract_strided_slice %113 {offsets = [0, 0], sizes = [8, 8], strides = [1, 1]} : vector<16x8xf32> to vector<8x8xf32>
    %174 = arith.truncf %173 : vector<8x8xf32> to vector<8x8xbf16>
    %175 = vector.extract_strided_slice %116 {offsets = [0, 0], sizes = [8, 8], strides = [1, 1]} : vector<16x8xf32> to vector<8x8xf32>
    %176 = arith.truncf %175 : vector<8x8xf32> to vector<8x8xbf16>
    %cst_79 = arith.constant dense<0.000000e+00> : vector<8x8xf32>
    %177 = tpu.matmul %172, %174, %cst_79 {dimension_numbers = #tpu.dot_dimension_numbers<[1], [1], [0], [0], [0, 0, 1, 0], [], []>} : vector<8x8xbf16>, vector<8x8xbf16>, vector<8x8xf32> -> vector<8x8xf32>
    %cst_80 = arith.constant dense<0xFF800000> : vector<8xf32>
    %178 = vector.multi_reduction <maximumf>, %177, %cst_80 [1] : vector<8x8xf32> to vector<8xf32>
    %179 = vector.shape_cast %178 : vector<8xf32> to vector<8x1xf32>
    %180 = vector.broadcast %179 : vector<8x1xf32> to vector<8x8xf32>
    %181 = arith.subf %177, %180 : vector<8x8xf32>
    %182 = math.exp %181 : vector<8x8xf32>
    %cst_81 = arith.constant dense<0.000000e+00> : vector<8xf32>
    %183 = vector.multi_reduction <add>, %182, %cst_81 [1] : vector<8x8xf32> to vector<8xf32>
    %184 = vector.shape_cast %183 : vector<8xf32> to vector<8x1xf32>
    %185 = tpu.reciprocal %184 {approx = true} : vector<8x1xf32> -> vector<8x1xf32>
    %186 = vector.broadcast %185 : vector<8x1xf32> to vector<8x8xf32>
    %187 = arith.mulf %182, %186 : vector<8x8xf32>
    %188 = arith.truncf %187 : vector<8x8xf32> to vector<8x8xbf16>
    %cst_82 = arith.constant dense<0.000000e+00> : vector<8x8xf32>
    %189 = tpu.matmul %188, %176, %cst_82 {dimension_numbers = #tpu.dot_dimension_numbers<[1], [0], [0], [1], [0, 0, 1, 1], [], []>} : vector<8x8xbf16>, vector<8x8xbf16>, vector<8x8xf32> -> vector<8x8xf32>
    %190 = arith.truncf %189 : vector<8x8xf32> to vector<8x8xbf16>
    %c3_83 = arith.constant 3 : index
    %c0_84 = arith.constant 0 : index
    %c0_85 = arith.constant 0 : index
    %191 = vector.load %arg4[%c3_83, %c0_84, %c0_85] : memref<4x8x32xbf16, #tpu.memory_space<vmem>>, vector<1x8x32xbf16>
    %192 = vector.shape_cast %191 : vector<1x8x32xbf16> to vector<8x32xbf16>
    %cst_86 = arith.constant dense<0.000000e+00> : vector<8x32xf32>
    %193 = tpu.matmul %190, %192, %cst_86 {dimension_numbers = #tpu.dot_dimension_numbers<[1], [0], [0], [1], [0, 0, 1, 1], [], []>} : vector<8x8xbf16>, vector<8x32xbf16>, vector<8x32xf32> -> vector<8x32xf32>
    %194 = arith.addf %143, %193 : vector<8x32xf32>
    %195 = vector.extract_strided_slice %170 {offsets = [8, 0], sizes = [8, 8], strides = [1, 1]} : vector<16x8xf32> to vector<8x8xf32>
    %196 = arith.truncf %195 : vector<8x8xf32> to vector<8x8xbf16>
    %197 = vector.extract_strided_slice %113 {offsets = [8, 0], sizes = [8, 8], strides = [1, 1]} : vector<16x8xf32> to vector<8x8xf32>
    %198 = arith.truncf %197 : vector<8x8xf32> to vector<8x8xbf16>
    %199 = vector.extract_strided_slice %116 {offsets = [8, 0], sizes = [8, 8], strides = [1, 1]} : vector<16x8xf32> to vector<8x8xf32>
    %200 = arith.truncf %199 : vector<8x8xf32> to vector<8x8xbf16>
    %cst_87 = arith.constant dense<0.000000e+00> : vector<8x8xf32>
    %201 = tpu.matmul %196, %198, %cst_87 {dimension_numbers = #tpu.dot_dimension_numbers<[1], [1], [0], [0], [0, 0, 1, 0], [], []>} : vector<8x8xbf16>, vector<8x8xbf16>, vector<8x8xf32> -> vector<8x8xf32>
    %cst_88 = arith.constant dense<0xFF800000> : vector<8xf32>
    %202 = vector.multi_reduction <maximumf>, %201, %cst_88 [1] : vector<8x8xf32> to vector<8xf32>
    %203 = vector.shape_cast %202 : vector<8xf32> to vector<8x1xf32>
    %204 = vector.broadcast %203 : vector<8x1xf32> to vector<8x8xf32>
    %205 = arith.subf %201, %204 : vector<8x8xf32>
    %206 = math.exp %205 : vector<8x8xf32>
    %cst_89 = arith.constant dense<0.000000e+00> : vector<8xf32>
    %207 = vector.multi_reduction <add>, %206, %cst_89 [1] : vector<8x8xf32> to vector<8xf32>
    %208 = vector.shape_cast %207 : vector<8xf32> to vector<8x1xf32>
    %209 = tpu.reciprocal %208 {approx = true} : vector<8x1xf32> -> vector<8x1xf32>
    %210 = vector.broadcast %209 : vector<8x1xf32> to vector<8x8xf32>
    %211 = arith.mulf %206, %210 : vector<8x8xf32>
    %212 = arith.truncf %211 : vector<8x8xf32> to vector<8x8xbf16>
    %cst_90 = arith.constant dense<0.000000e+00> : vector<8x8xf32>
    %213 = tpu.matmul %212, %200, %cst_90 {dimension_numbers = #tpu.dot_dimension_numbers<[1], [0], [0], [1], [0, 0, 1, 1], [], []>} : vector<8x8xbf16>, vector<8x8xbf16>, vector<8x8xf32> -> vector<8x8xf32>
    %214 = arith.truncf %213 : vector<8x8xf32> to vector<8x8xbf16>
    %c3_91 = arith.constant 3 : index
    %c0_92 = arith.constant 0 : index
    %c0_93 = arith.constant 0 : index
    %215 = vector.load %arg4[%c3_91, %c0_92, %c0_93] : memref<4x8x32xbf16, #tpu.memory_space<vmem>>, vector<1x8x32xbf16>
    %216 = vector.shape_cast %215 : vector<1x8x32xbf16> to vector<8x32xbf16>
    %cst_94 = arith.constant dense<0.000000e+00> : vector<8x32xf32>
    %217 = tpu.matmul %214, %216, %cst_94 {dimension_numbers = #tpu.dot_dimension_numbers<[1], [0], [0], [1], [0, 0, 1, 1], [], []>} : vector<8x8xbf16>, vector<8x32xbf16>, vector<8x32xf32> -> vector<8x32xf32>
    %218 = arith.addf %167, %217 : vector<8x32xf32>
    %219 = vector.extract_strided_slice %194 {offsets = [0, 0], sizes = [1, 32], strides = [1, 1]} : vector<8x32xf32> to vector<1x32xf32>
    %220 = vector.extract_strided_slice %194 {offsets = [1, 0], sizes = [1, 32], strides = [1, 1]} : vector<8x32xf32> to vector<1x32xf32>
    %221 = vector.extract_strided_slice %194 {offsets = [2, 0], sizes = [1, 32], strides = [1, 1]} : vector<8x32xf32> to vector<1x32xf32>
    %222 = vector.extract_strided_slice %194 {offsets = [3, 0], sizes = [1, 32], strides = [1, 1]} : vector<8x32xf32> to vector<1x32xf32>
    %223 = vector.extract_strided_slice %194 {offsets = [4, 0], sizes = [1, 32], strides = [1, 1]} : vector<8x32xf32> to vector<1x32xf32>
    %224 = vector.extract_strided_slice %194 {offsets = [5, 0], sizes = [1, 32], strides = [1, 1]} : vector<8x32xf32> to vector<1x32xf32>
    %225 = vector.extract_strided_slice %194 {offsets = [6, 0], sizes = [1, 32], strides = [1, 1]} : vector<8x32xf32> to vector<1x32xf32>
    %226 = vector.extract_strided_slice %194 {offsets = [7, 0], sizes = [1, 32], strides = [1, 1]} : vector<8x32xf32> to vector<1x32xf32>
    %227 = tpu.concatenate %219, %220, %221, %222, %223, %224, %225, %226 in 1 : vector<1x32xf32>, vector<1x32xf32>, vector<1x32xf32>, vector<1x32xf32>, vector<1x32xf32>, vector<1x32xf32>, vector<1x32xf32>, vector<1x32xf32> -> vector<1x256xf32>
    %228 = vector.extract_strided_slice %218 {offsets = [0, 0], sizes = [1, 32], strides = [1, 1]} : vector<8x32xf32> to vector<1x32xf32>
    %229 = vector.extract_strided_slice %218 {offsets = [1, 0], sizes = [1, 32], strides = [1, 1]} : vector<8x32xf32> to vector<1x32xf32>
    %230 = vector.extract_strided_slice %218 {offsets = [2, 0], sizes = [1, 32], strides = [1, 1]} : vector<8x32xf32> to vector<1x32xf32>
    %231 = vector.extract_strided_slice %218 {offsets = [3, 0], sizes = [1, 32], strides = [1, 1]} : vector<8x32xf32> to vector<1x32xf32>
    %232 = vector.extract_strided_slice %218 {offsets = [4, 0], sizes = [1, 32], strides = [1, 1]} : vector<8x32xf32> to vector<1x32xf32>
    %233 = vector.extract_strided_slice %218 {offsets = [5, 0], sizes = [1, 32], strides = [1, 1]} : vector<8x32xf32> to vector<1x32xf32>
    %234 = vector.extract_strided_slice %218 {offsets = [6, 0], sizes = [1, 32], strides = [1, 1]} : vector<8x32xf32> to vector<1x32xf32>
    %235 = vector.extract_strided_slice %218 {offsets = [7, 0], sizes = [1, 32], strides = [1, 1]} : vector<8x32xf32> to vector<1x32xf32>
    %236 = tpu.concatenate %228, %229, %230, %231, %232, %233, %234, %235 in 1 : vector<1x32xf32>, vector<1x32xf32>, vector<1x32xf32>, vector<1x32xf32>, vector<1x32xf32>, vector<1x32xf32>, vector<1x32xf32>, vector<1x32xf32> -> vector<1x256xf32>
    %237 = tpu.concatenate %227, %236 in 0 : vector<1x256xf32>, vector<1x256xf32> -> vector<2x256xf32>
    %c0_95 = arith.constant 0 : index
    %c0_96 = arith.constant 0 : index
    %238 = vector.load %arg5[%c0_95, %c0_96] : memref<2x256xf32, #tpu.memory_space<vmem>>, vector<2x256xf32>
    tpu.vector_store %arg5[%c0_95, %c0_96], %237 {strides = array<i32>} : memref<2x256xf32, #tpu.memory_space<vmem>>, vector<2x256xf32>,
    return
  }
}

</mosaic_0001>

<bundles_post_ra>
// kernel: tpu_custom_call.1
= control target key start
LH: loop header
LB: loop body
LE: loop exit
PB: predicated region body
PF: predicated region fallthrough
CT: control target
= control target key end

     0   :  { %s1336_s0 = inlined_call_operand.vmem [shape: bf16[16,32], index: 0, kind: input, shape index: {}]   ;;  %s1337_s1 = inlined_call_operand.vmem [shape: bf16[4,32,8], index: 1, kind: input, shape index: {}]   ;;  %s1338_s2 = inlined_call_operand.vmem [shape: bf16[2,32,8], index: 2, kind: input, shape index: {}]   ;;  %s1339_s3 = inlined_call_operand.vmem [shape: bf16[2,32,8], index: 3, kind: input, shape index: {}]   ;;  %s1340_s4 = inlined_call_operand.vmem [shape: bf16[4,8,32], index: 4, kind: input, shape index: {}]   ;;  %s1341_s5 = inlined_call_operand.hbm [shape: f32[2,256], index: 5, kind: output, shape index: {}]  }
   0x1   :  { %v1056_v0 = vld [vmem:[%s1338_s2 + $0x8] sm:$0xff]  ;;  %v1055_v3 = vld [vmem:[%s1338_s2] sm:$0xff] }
   0x2   :  { %v1058_v1 = vld [vmem:[%s1339_s3 + $0x8] sm:$0xff]  ;;  %55 = vmatpush.bf16.msra.mxu0 %v1056_v0  ;;  %v1057_v4 = vld [vmem:[%s1339_s3] sm:$0xff] }
   0x3   :  { %v1060_v2 = vld [vmem:[%s1337_s1 + $0x8] sm:$0xff]  ;;  %85 = vmatpush.bf16.msra.mxu1 %v1058_v1 }
   0x4   :  { %10 = vsyncpa [#allocation3], 0  ;;  %115 = vmatpush.bf16.msra.mxu2 %v1060_v2  ;;  %v1059_v5 = vld [vmem:[%s1337_s1] sm:$0xff]  ;;  %vm45_vm0 = vcmask 261120   ;;  %vm126_vm1 = vcmask 64512   ;;  %vm161_vm2 = vcmask 1043456  }
   0x5   :  { %v1188_v6 = vld [vmem:[%s1336_s0] sm:$0xff]  ;;  %v1062_v26 = vld [vmem:[%s1337_s1 + $0x18] sm:$0xff]  ;;  %v1061_v27 = vld [vmem:[%s1337_s1 + $0x10] sm:$0xff]  ;;  %s1134_s6 = smov 64   ;;  %s1135_s0 = smov 96   ;;  %vm859_vm3 = vcmask 523264  }
   0x6   :  { %56 = vmatpush.bf16.msra.mxu0 %v1055_v3  ;;  %v179_v44 = vld [vmem:[%s1340_s4] sm:$0xf]  ;;  %vm861_vm4 = vcmask 785408   ;;  %vm905_vm5 = vcmask 1040384   ;;  %s1136_s7 = smov [#allocation2]   ;;  %s922_s11 = sshll.u32 %s1341_s5, 4  ;;  %s923_s11 = int_to_ptr.hbm [resolvable:$true] %s922_s11 }
   0x7   :  { %86 = vmatpush.bf16.msra.mxu1 %v1057_v4  ;;  %v336_v45 = vsel %vm161_vm2, %v179_v44, 0  ;;  %s920_s8 = sshll.u32 %s1136_s7, 4  ;;  %vm911_vm6 = vcmask 1041408   ;;  %s921_s8 = int_to_ptr.vmem [resolvable:$true] %s920_s8 }
   0x8   :  { %116 = vmatpush.bf16.msra.mxu2 %v1059_v5 }
   0x9   :  { %943 = vmatmul.msk.bf16.vlgmr.msra.gmra.mxu0 %vm45_vm0, %v1188_v6 }
   0xa   :  { %952 = vmatmul.msk.bf16.vlgmr.msra.gmra.mxu1 %vm45_vm0, %v1188_v6 }
   0xb   :  { %961 = vmatmul.msk.bf16.vlgmr.msra.gmra.mxu2 %vm45_vm0, %v1188_v6 }
  0x86   :  { %v58_v7 = vpop.f32.mrf.mxu0 }
  0x87   :  { %v88_v8 = vpop.f32.mrf.mxu1  ;;  %v124_v9 = vpack.c.bf16 %v58_v7, %v58_v7 }
  0x88   :  { %v125_v10 = vpack.c.bf16 %v88_v8, %v88_v8 }
  0x89   :  { %v131_v11 = vsel %vm126_vm1, %v124_v9, 0 }
  0x8a   :  { %v163_v12 = vsel %vm161_vm2, %v125_v10, 0  ;;  %140 = vmatpush.bf16.xpose.msra.mxu3 %v131_v11 }
  0x8b   :  { %172 = vmatpush.bf16.msrb.mxu0 %v163_v12 }
  0x8e   :  { %v118_v13 = vpop.f32.mrf.mxu2  ;;  %v60_v15 = vpop.f32.mrf.mxu0 }
  0x8f   :  { %276 = vmatpush.bf16.xpose.msra.mxu0 %v131_v11  ;;  %v123_v14 = vpack.c.bf16 %v118_v13, %v118_v13  ;;  %v181_v16 = vpack.c.bf16 %v60_v15, %v60_v15  ;;  %v90_v20 = vpop.f32.mrf.mxu1 }
  0x90   :  { %v182_v28 = vpack.c.bf16 %v90_v20, %v90_v20 }
  0x91   :  { %962 = vmatmul.msk.bf16.vlgmr.msra.gmra.mxu3 %vm126_vm1, %v123_v14  ;;  %v187_v17 = vsel %vm126_vm1, %v181_v16, 0 }
  0x92   :  { %196 = vmatpush.bf16.xpose.msrb.mxu1 %v187_v17  ;;  %257 = vmatpush.bf16.msrb.mxu3 %v1062_v26  ;;  %v218_v29 = vsel %vm161_vm2, %v182_v28, 0  ;;  %v1064_v26 = vld [vmem:[%s1338_s2 + $0x18] sm:$0xff] }
  0x93   :  { %227 = vmatpush.bf16.msrb.mxu2 %v218_v29 }
  0x96   :  { %v120_v18 = vpop.f32.mrf.mxu2  ;;  %258 = vmatpush.bf16.msrb.mxu3 %v1061_v27  ;;  %v1063_v27 = vld [vmem:[%s1338_s2 + $0x10] sm:$0xff] }
  0x97   :  { %v180_v19 = vpack.c.bf16 %v120_v18, %v120_v18 }
  0x99   :  { %964 = vmatmul.msk.bf16.vlgmr.msrb.gmra.mxu1 %vm126_vm1, %v180_v19 }
  0x9a   :  { %304 = vmatpush.bf16.msra.mxu1 %v163_v12  ;;  %345 = vmatpush.bf16.msra.mxu3 %v336_v45 }
  0x9e   :  { %390 = vmatpush.bf16.msrb.mxu1 %v218_v29  ;;  %v1068_v29 = vld [vmem:[%s1337_s1 + $0x28] sm:$0xff] }
  0xa1   :  { %978 = vmatmul.msk.bf16.vlgmr.msrb.gmra.mxu3 %vm45_vm0, %v1188_v6 }
  0xa2   :  { %423 = vmatpush.bf16.msrb.mxu3 %v336_v45 }
 0x114   :  { %v142_v21 = vpop.f32.mrf.mxu3 }
 0x115   :  { %v146_v22 = vsel %vm126_vm1, %v142_v21, -inf }
 0x116   :  { %147 = vmax.xlane.f32.xlu0 %v146_v22  ;;  %v198_v23 = vpop.f32.mrf.mxu1 }
 0x117   :  { %v202_v35 = vsel %vm126_vm1, %v198_v23, -inf }
 0x11c   :  { %v144_v24 = vpop.f32.mrf.mxu3 }
 0x11e   :  { %v200_v25 = vpop.f32.mrf.mxu1 }
 0x124   :  { %v260_v40 = vpop.f32.mrf.mxu3 }
 0x125   :  { %v265_v41 = vpack.c.bf16 %v260_v40, %v260_v40 }
 0x12c   :  { %v262_v42 = vpop.f32.mrf.mxu3 }
 0x12d   :  { %v351_v43 = vpack.c.bf16 %v262_v42, %v262_v42 }
 0x189   :  { %v148_v30 = vpop.xlane.xlu0 %147 }
 0x18a   :  { %v149_v31 = vsub.f32 %v142_v21, %v148_v30 }
 0x18c   :  { %v150_v32 = vmul.f32 1.442695, %v149_v31  ;;  %v1067_v31 = vld [vmem:[%s1337_s1 + $0x20] sm:$0xff] }
 0x18e   :  { %1075 = vpow2.f32 %v150_v32 }
 0x194   :  { %v1076_v33 = vpop.eup %1075 }
 0x195   :  { %v152_v34 = vsel %vm126_vm1, %v1076_v33, 0.0 }
 0x196   :  { %153 = vadd.xlane.f32.xlu0 %v152_v34 }
 0x19e   :  { %203 = vmax.xlane.f32.xlu0 %v202_v35 }
 0x209   :  { %v154_v36 = vpop.xlane.xlu0 %153 }
 0x20a   :  { %1077 = vrcp.f32 %v154_v36 }
 0x210   :  { %v1078_v37 = vpop.eup %1077 }
 0x211   :  { %v156_v38 = vmul.f32 %v1078_v37, %v1076_v33  ;;  %v204_v51 = vpop.xlane.xlu0 %203 }
 0x212   :  { %v205_v52 = vsub.f32 %v198_v23, %v204_v51 }
 0x213   :  { %v157_v39 = vpack.c.bf16 %v156_v38, %v156_v38 }
 0x214   :  { %v206_v54 = vmul.f32 1.442695, %v205_v52  ;;  %v1066_v52 = vld [vmem:[%s1339_s3 + $0x18] sm:$0xff] }
 0x215   :  { %963 = vmatmul.msk.bf16.vlgmr.msrb.gmra.mxu0 %vm126_vm1, %v157_v39 }
 0x216   :  { %362 = vmatpush.bf16.xpose.msrb.mxu0 %v187_v17  ;;  %1079 = vpow2.f32 %v206_v54  ;;  %v981_v17 = vld [vmem:[%s1340_s4 + $0x4] sm:$0xf] }
 0x217   :  { %v317_v19 = vsel %vm161_vm2, %v981_v17, 0 }
 0x218   :  { %326 = vmatpush.bf16.msra.mxu2 %v317_v19 }
 0x21c   :  { %v1080_v57 = vpop.eup %1079 }
 0x21d   :  { %v208_v59 = vsel %vm126_vm1, %v1080_v57, 0.0 }
 0x225   :  { %979 = vmatmul.msk.bf16.vlgmr.msra.gmra.mxu0 %vm126_vm1, %v265_v41 }
 0x226   :  { %452 = vmatpush.bf16.msra.mxu0 %v1064_v26 }
 0x22a   :  { %453 = vmatpush.bf16.msra.mxu0 %v1063_v27 }
 0x235   :  { %984 = vmatmul.msk.bf16.vlgmr.msrb.gmra.mxu0 %vm126_vm1, %v351_v43 }
 0x245   :  { %1000 = vmatmul.msk.bf16.vlgmr.msra.gmra.mxu0 %vm45_vm0, %v1188_v6 }
 0x292   :  { %v174_v46 = vpop.f32.mrf.mxu0 }
 0x293   :  { %v178_v47 = vpack.c.bf16 %v174_v46, %v174_v46 }
 0x295   :  { %983 = vmatmul.msk.bf16.vlgmr.msra.gmra.mxu3 %vm126_vm1, %v178_v47 }
 0x29a   :  { %v176_v48 = vpop.f32.mrf.mxu0 }
 0x2a2   :  { %v278_v49 = vpop.f32.mrf.mxu0 }
 0x2a3   :  { %v282_v50 = vsel %vm126_vm1, %v278_v49, -inf }
 0x2a4   :  { %283 = vmax.xlane.f32.xlu1 %v282_v50 }
 0x2aa   :  { %v280_v53 = vpop.f32.mrf.mxu0 }
 0x2ab   :  { %v1065_v53 = vld [vmem:[%s1339_s3 + $0x10] sm:$0xff] }
 0x2b2   :  { %v364_v55 = vpop.f32.mrf.mxu0 }
 0x2b3   :  { %v368_v56 = vsel %vm126_vm1, %v364_v55, -inf }
 0x2b4   :  { %369 = vmax.xlane.f32.xlu1 %v368_v56 }
 0x2ba   :  { %v366_v58 = vpop.f32.mrf.mxu0 }
 0x2bc   :  { %209 = vadd.xlane.f32.xlu1 %v208_v59 }
 0x2c2   :  { %v455_v38 = vpop.f32.mrf.mxu0 }
 0x2c3   :  { %v523_v39 = vpack.c.bf16 %v455_v38, %v455_v38 }
 0x2c5   :  { %v529_v40 = vsel %vm126_vm1, %v523_v39, 0 }
 0x2c6   :  { %538 = vmatpush.bf16.xpose.msra.mxu3 %v529_v40 }
 0x2ca   :  { %v457_v41 = vpop.f32.mrf.mxu0 }
 0x2cb   :  { %v599_v42 = vpack.c.bf16 %v457_v41, %v457_v41 }
 0x2cd   :  { %v1258_v43 = vsel %vm126_vm1, %v599_v42, 0 }
 0x317   :  { %v284_v60 = vpop.xlane.xlu1 %283 }
 0x318   :  { %v285_v61 = vsub.f32 %v278_v49, %v284_v60  ;;  %v1224_v62 = vpop.f32.mrf.mxu3 }
 0x31a   :  { %v286_v63 = vmul.f32 1.442695, %v285_v61 }
 0x31c   :  { %1081 = vpow2.f32 %v286_v63 }
 0x320   :  { %v349_v0 = vpop.f32.mrf.mxu3 }
 0x322   :  { %v1082_v1 = vpop.eup %1081 }
 0x323   :  { %v288_v2 = vsel %vm126_vm1, %v1082_v1, 0.0 }
 0x324   :  { %289 = vadd.xlane.f32.xlu2 %v288_v2 }
 0x327   :  { %v370_v3 = vpop.xlane.xlu1 %369 }
 0x328   :  { %v371_v4 = vsub.f32 %v364_v55, %v370_v3 }
 0x32a   :  { %v372_v5 = vmul.f32 1.442695, %v371_v4 }
 0x32c   :  { %1083 = vpow2.f32 %v372_v5 }
 0x32f   :  { %v210_v7 = vpop.xlane.xlu1 %209 }
 0x330   :  { %1085 = vrcp.f32 %v210_v7 }
 0x332   :  { %v1084_v8 = vpop.eup %1083 }
 0x333   :  { %v374_v9 = vsel %vm126_vm1, %v1084_v8, 0.0 }
 0x334   :  { %375 = vadd.xlane.f32.xlu2 %v374_v9 }
 0x336   :  { %v1086_v10 = vpop.eup %1085 }
 0x337   :  { %v212_v11 = vmul.f32 %v1086_v10, %v1080_v57 }
 0x339   :  { %v213_v12 = vpack.c.bf16 %v212_v11, %v212_v11 }
 0x33b   :  { %965 = vmatmul.msk.bf16.vlgmr.msrb.gmra.mxu2 %vm126_vm1, %v213_v12 }
 0x33c   :  { %407 = vmatpush.bf16.msrb.mxu2 %v317_v19 }
 0x397   :  { %v290_v13 = vpop.xlane.xlu2 %289 }
 0x398   :  { %1087 = vrcp.f32 %v290_v13 }
 0x39e   :  { %v1088_v14 = vpop.eup %1087 }
 0x39f   :  { %v292_v15 = vmul.f32 %v1088_v14, %v1082_v1  ;;  %v1029_v14 = vld [vmem:[%s1340_s4 + $0x8] sm:$0xf] }
 0x3a1   :  { %v293_v16 = vpack.c.bf16 %v292_v15, %v292_v15  ;;  %v1070_v15 = vld [vmem:[%s1337_s1 + $0x38] sm:$0xff] }
 0x3a3   :  { %980 = vmatmul.msk.bf16.vlgmr.msra.gmra.mxu1 %vm126_vm1, %v293_v16  ;;  %v582_v16 = vsel %vm161_vm2, %v1029_v14, 0 }
 0x3a4   :  { %483 = vmatpush.bf16.msra.mxu1 %v1066_v52 }
 0x3a7   :  { %v376_v18 = vpop.xlane.xlu2 %375 }
 0x3a8   :  { %1089 = vrcp.f32 %v376_v18  ;;  %484 = vmatpush.bf16.msra.mxu1 %v1065_v53 }
 0x3ae   :  { %v1090_v20 = vpop.eup %1089 }
 0x3af   :  { %v378_v21 = vmul.f32 %v1090_v20, %v1084_v8 }
 0x3b1   :  { %v379_v22 = vpack.c.bf16 %v378_v21, %v378_v21 }
 0x3b3   :  { %985 = vmatmul.msk.bf16.vlgmr.msrb.gmra.mxu1 %vm126_vm1, %v379_v22 }
 0x3b4   :  { %591 = vmatpush.bf16.msrb.mxu1 %v582_v16 }
 0x3be   :  { %v229_v23 = vpop.f32.mrf.mxu2 }
 0x3bf   :  { %v233_v24 = vpack.c.bf16 %v229_v23, %v229_v23 }
 0x3c1   :  { %987 = vmatmul.msk.bf16.vlgmr.msrb.gmra.mxu3 %vm126_vm1, %v233_v24 }
 0x3c3   :  { %1013 = vmatmul.msk.bf16.vlgmr.msra.gmra.mxu1 %vm45_vm0, %v1188_v6 }
 0x3c4   :  { %692 = vmatpush.bf16.msra.mxu1 %v1070_v15 }
 0x3c6   :  { %v231_v25 = vpop.f32.mrf.mxu2 }
 0x3c7   :  { %v1069_v25 = vld [vmem:[%s1337_s1 + $0x30] sm:$0xff] }
 0x3c8   :  { %693 = vmatpush.bf16.msra.mxu1 %v1069_v25 }
 0x420   :  { %v306_v28 = vpop.f32.mrf.mxu1 }
 0x421   :  { %v310_v30 = vpack.c.bf16 %v306_v28, %v306_v28 }
 0x423   :  { %982 = vmatmul.msk.bf16.vlgmr.msra.gmra.mxu2 %vm126_vm1, %v310_v30 }
 0x424   :  { %514 = vmatpush.bf16.msra.mxu2 %v1068_v29 }
 0x428   :  { %v308_v32 = vpop.f32.mrf.mxu1  ;;  %515 = vmatpush.bf16.msra.mxu2 %v1067_v31 }
 0x430   :  { %v392_v33 = vpop.f32.mrf.mxu1 }
 0x431   :  { %v396_v34 = vpack.c.bf16 %v392_v33, %v392_v33 }
 0x433   :  { %986 = vmatmul.msk.bf16.vlgmr.msrb.gmra.mxu2 %vm126_vm1, %v396_v34 }
 0x434   :  { %614 = vmatpush.bf16.xpose.msrb.mxu2 %v1258_v43 }
 0x438   :  { %v394_v35 = vpop.f32.mrf.mxu1 }
 0x440   :  { %v486_v63 = vpop.f32.mrf.mxu1 }
 0x441   :  { %v524_v0 = vpack.c.bf16 %v486_v63, %v486_v63 }
 0x443   :  { %1026 = vmatmul.msk.bf16.vlgmr.msra.gmra.mxu2 %vm45_vm0, %v1188_v6  ;;  %v560_v2 = vsel %vm161_vm2, %v524_v0, 0 }
 0x444   :  { %v1254_v36 = vpop.f32.mrf.mxu3  ;;  %711 = vmatpush.bf16.xpose.msra.mxu2 %v529_v40  ;;  %569 = vmatpush.bf16.msrb.mxu0 %v560_v2 }
 0x448   :  { %v488_v5 = vpop.f32.mrf.mxu1  ;;  %662 = vmatpush.bf16.msra.mxu0 %v582_v16 }
 0x449   :  { %v600_v7 = vpack.c.bf16 %v488_v5, %v488_v5 }
 0x44b   :  { %v636_v11 = vsel %vm161_vm2, %v600_v7, 0 }
 0x44c   :  { %v427_v37 = vpop.f32.mrf.mxu3  ;;  %645 = vmatpush.bf16.msrb.mxu3 %v636_v11 }
 0x4a6   :  { %v1261_v44 = vpop.f32.mrf.mxu2 }
 0x4a7   :  { %v348_v32 = vadd.f32 %v1224_v62, %v1261_v44 }
 0x4ae   :  { %v330_v45 = vpop.f32.mrf.mxu2 }
 0x4b6   :  { %v1263_v46 = vpop.f32.mrf.mxu2 }
 0x4b7   :  { %v426_v37 = vadd.f32 %v1254_v36, %v1263_v46 }
 0x4be   :  { %v411_v47 = vpop.f32.mrf.mxu2 }
 0x4c6   :  { %v517_v48 = vpop.f32.mrf.mxu2 }
 0x4c7   :  { %v522_v49 = vpack.c.bf16 %v517_v48, %v517_v48 }
 0x4c9   :  { %1027 = vmatmul.msk.bf16.vlgmr.msra.gmra.mxu3 %vm126_vm1, %v522_v49 }
 0x4ca   :  { %739 = vmatpush.bf16.msra.mxu3 %v560_v2 }
 0x4ce   :  { %v519_v50 = vpop.f32.mrf.mxu2 }
 0x4cf   :  { %v598_v51 = vpack.c.bf16 %v519_v50, %v519_v50 }
 0x4d1   :  { %1031 = vmatmul.msk.bf16.vlgmr.msrb.gmra.mxu2 %vm126_vm1, %v598_v51 }
 0x4d2   :  { %807 = vmatpush.bf16.msrb.mxu2 %v636_v11 }
 0x54c   :  { %v540_v54 = vpop.f32.mrf.mxu3 }
 0x54d   :  { %v544_v55 = vsel %vm126_vm1, %v540_v54, -inf }
 0x54e   :  { %545 = vmax.xlane.f32.xlu2 %v544_v55 }
 0x554   :  { %v542_v56 = vpop.f32.mrf.mxu3  ;;  %v616_v57 = vpop.f32.mrf.mxu2 }
 0x555   :  { %v620_v58 = vsel %vm126_vm1, %v616_v57, -inf }
 0x556   :  { %621 = vmax.xlane.f32.xlu1 %v620_v58  ;;  %v1049_v58 = vld [vmem:[%s1340_s4 + $0xc] sm:$0xf]  ;;  %s1133_s4 = smov 32  }
 0x55c   :  { %v618_v59 = vpop.f32.mrf.mxu2 }
 0x55d   :  { %v752_v59 = vsel %vm161_vm2, %v1049_v58, 0 }
 0x5c1   :  { %v546_v60 = vpop.xlane.xlu2 %545 }
 0x5c2   :  { %v547_v61 = vsub.f32 %v540_v54, %v546_v60 }
 0x5c4   :  { %v548_v1 = vmul.f32 1.442695, %v547_v61 }
 0x5c6   :  { %1091 = vpow2.f32 %v548_v1 }
 0x5c9   :  { %v622_v3 = vpop.xlane.xlu1 %621 }
 0x5ca   :  { %v623_v4 = vsub.f32 %v616_v57, %v622_v3 }
 0x5cc   :  { %v1092_v8 = vpop.eup %1091  ;;  %v624_v9 = vmul.f32 1.442695, %v623_v4 }
 0x5cd   :  { %v550_v10 = vsel %vm126_vm1, %v1092_v8, 0.0 }
 0x5ce   :  { %1093 = vpow2.f32 %v624_v9  ;;  %551 = vadd.xlane.f32.xlu0 %v550_v10 }
 0x5d4   :  { %v1094_v12 = vpop.eup %1093 }
 0x5d5   :  { %v626_v13 = vsel %vm126_vm1, %v1094_v12, 0.0 }
 0x5d6   :  { %627 = vadd.xlane.f32.xlu1 %v626_v13 }
 0x641   :  { %v552_v17 = vpop.xlane.xlu0 %551 }
 0x642   :  { %1095 = vrcp.f32 %v552_v17 }
 0x648   :  { %v1096_v18 = vpop.eup %1095 }
 0x649   :  { %v554_v19 = vmul.f32 %v1096_v18, %v1092_v8  ;;  %v628_v20 = vpop.xlane.xlu1 %627 }
 0x64a   :  { %1097 = vrcp.f32 %v628_v20 }
 0x64b   :  { %v555_v21 = vpack.c.bf16 %v554_v19, %v554_v19 }
 0x64d   :  { %1028 = vmatmul.msk.bf16.vlgmr.msrb.gmra.mxu0 %vm126_vm1, %v555_v21 }
 0x64e   :  { %761 = vmatpush.bf16.msrb.mxu0 %v752_v59 }
 0x650   :  { %v1098_v22 = vpop.eup %1097 }
 0x651   :  { %v630_v23 = vmul.f32 %v1098_v22, %v1094_v12 }
 0x653   :  { %v631_v24 = vpack.c.bf16 %v630_v23, %v630_v23 }
 0x655   :  { %1032 = vmatmul.msk.bf16.vlgmr.msrb.gmra.mxu3 %vm126_vm1, %v631_v24 }
 0x656   :  { %824 = vmatpush.bf16.msrb.mxu3 %v752_v59 }
 0x6ca   :  { %v571_v26 = vpop.f32.mrf.mxu0 }
 0x6cb   :  { %v575_v27 = vpack.c.bf16 %v571_v26, %v571_v26 }
 0x6cd   :  { %1030 = vmatmul.msk.bf16.vlgmr.msrb.gmra.mxu1 %vm126_vm1, %v575_v27 }
 0x6ce   :  { %779 = vmatpush.bf16.xpose.msrb.mxu1 %v1258_v43 }
 0x6d2   :  { %v573_v28 = vpop.f32.mrf.mxu0 }
 0x6d8   :  { %v647_v29 = vpop.f32.mrf.mxu3 }
 0x6d9   :  { %v651_v30 = vpack.c.bf16 %v647_v29, %v647_v29 }
 0x6db   :  { %1033 = vmatmul.msk.bf16.vlgmr.msra.gmra.mxu0 %vm126_vm1, %v651_v30 }
 0x6dd   :  { %1046 = vmatmul.msk.bf16.vlgmr.msra.gmra.mxu1 %vm45_vm0, %v1188_v6 }
 0x6e0   :  { %v649_v31 = vpop.f32.mrf.mxu3 }
 0x74a   :  { %v593_v33 = vpop.f32.mrf.mxu1 }
 0x74b   :  { %v597_v34 = vadd.f32 %v593_v33, %v348_v32 }
 0x752   :  { %v595_v35 = vpop.f32.mrf.mxu1 }
 0x758   :  { %v664_v38 = vpop.f32.mrf.mxu0 }
 0x759   :  { %v1302_v39 = vadd.f32 %v664_v38, %v426_v37 }
 0x75a   :  { %v695_v40 = vpop.f32.mrf.mxu1 }
 0x75b   :  { %v700_v41 = vpack.c.bf16 %v695_v40, %v695_v40 }
 0x75d   :  { %1047 = vmatmul.msk.bf16.vlgmr.msra.gmra.mxu2 %vm126_vm1, %v700_v41 }
 0x760   :  { %v666_v42 = vpop.f32.mrf.mxu0 }
 0x762   :  { %v697_v43 = vpop.f32.mrf.mxu1 }
 0x763   :  { %v768_v6 = vpack.c.bf16 %v697_v43, %v697_v43 }
 0x765   :  { %1051 = vmatmul.msk.bf16.vlgmr.msrb.gmra.mxu1 %vm126_vm1, %v768_v6 }
 0x7e0   :  { %v713_v45 = vpop.f32.mrf.mxu2 }
 0x7e1   :  { %v717_v62 = vsel %vm126_vm1, %v713_v45, -inf }
 0x7e2   :  { %718 = vmax.xlane.f32.xlu0 %v717_v62  ;;  %v781_v44 = vpop.f32.mrf.mxu1 }
 0x7e3   :  { %v785_v47 = vsel %vm126_vm1, %v781_v44, -inf }
 0x7e4   :  { %786 = vmax.xlane.f32.xlu2 %v785_v47 }
 0x7e8   :  { %v715_v36 = vpop.f32.mrf.mxu2 }
 0x7ea   :  { %v783_v46 = vpop.f32.mrf.mxu1 }
 0x855   :  { %v719_v48 = vpop.xlane.xlu0 %718 }
 0x856   :  { %v720_v49 = vsub.f32 %v713_v45, %v719_v48 }
 0x857   :  { %v787_v50 = vpop.xlane.xlu2 %786 }
 0x858   :  { %v721_v51 = vmul.f32 1.442695, %v720_v49  ;;  %v788_v52 = vsub.f32 %v781_v44, %v787_v50 }
 0x85a   :  { %1099 = vpow2.f32 %v721_v51  ;;  %v789_v53 = vmul.f32 1.442695, %v788_v52 }
 0x85c   :  { %1101 = vpow2.f32 %v789_v53 }
 0x860   :  { %v1100_v54 = vpop.eup %1099 }
 0x861   :  { %v723_v55 = vsel %vm126_vm1, %v1100_v54, 0.0 }
 0x862   :  { %v1102_v56 = vpop.eup %1101  ;;  %724 = vadd.xlane.f32.xlu0 %v723_v55 }
 0x863   :  { %v791_v57 = vsel %vm126_vm1, %v1102_v56, 0.0 }
 0x864   :  { %792 = vadd.xlane.f32.xlu2 %v791_v57 }
 0x8d5   :  { %v725_v60 = vpop.xlane.xlu0 %724 }
 0x8d6   :  { %1103 = vrcp.f32 %v725_v60 }
 0x8d7   :  { %v793_v61 = vpop.xlane.xlu2 %792 }
 0x8d8   :  { %1105 = vrcp.f32 %v793_v61 }
 0x8dc   :  { %v1104_v63 = vpop.eup %1103 }
 0x8dd   :  { %v727_v0 = vmul.f32 %v1104_v63, %v1100_v54 }
 0x8de   :  { %v1106_v1 = vpop.eup %1105 }
 0x8df   :  { %v728_v2 = vpack.c.bf16 %v727_v0, %v727_v0  ;;  %v795_v3 = vmul.f32 %v1106_v1, %v1102_v56 }
 0x8e1   :  { %v796_v4 = vpack.c.bf16 %v795_v3, %v795_v3  ;;  %1048 = vmatmul.msk.bf16.vlgmr.msra.gmra.mxu3 %vm126_vm1, %v728_v2 }
 0x8e3   :  { %1052 = vmatmul.msk.bf16.vlgmr.msrb.gmra.mxu2 %vm126_vm1, %v796_v4 }
 0x964   :  { %v741_v5 = vpop.f32.mrf.mxu3 }
 0x965   :  { %v745_v7 = vpack.c.bf16 %v741_v5, %v741_v5 }
 0x966   :  { %v809_v8 = vpop.f32.mrf.mxu2 }
 0x967   :  { %v813_v9 = vpack.c.bf16 %v809_v8, %v809_v8  ;;  %1050 = vmatmul.msk.bf16.vlgmr.msrb.gmra.mxu0 %vm126_vm1, %v745_v7 }
 0x969   :  { %1053 = vmatmul.msk.bf16.vlgmr.msrb.gmra.mxu3 %vm126_vm1, %v813_v9 }
 0x96c   :  { %v743_v10 = vpop.f32.mrf.mxu3 }
 0x96e   :  { %v811_v11 = vpop.f32.mrf.mxu2 }
 0x9e4   :  { %v763_v12 = vpop.f32.mrf.mxu0 }
 0x9e5   :  { %v767_v13 = vadd.f32 %v763_v12, %v597_v34 }
 0x9e7   :  { %v846_v14 = vrot.slane %v767_v13, 5  ;;  %v832_v15 = vrot.slane %v767_v13, 1  ;;  %v850_v20 = vrot.slane %v767_v13, 6  ;;  %v854_v24 = vrot.slane %v767_v13, 7 }
 0x9e8   :  { %v840_v27 = vrot.slane %v767_v13, 3  ;;  %v836_v28 = vrot.slane %v767_v13, 2  ;;  %v844_v6 = vrot.slane %v767_v13, 4 }
 0x9e9   :  { %847 = vrot.lane.b32.xlu0 %v846_v14, %s1133_s4  ;;  %833 = vrot.lane.b32.xlu1 %v832_v15, %s1133_s4 }
 0x9ec   :  { %v765_v16 = vpop.f32.mrf.mxu0  ;;  %v826_v17 = vpop.f32.mrf.mxu3 }
 0x9ed   :  { %v830_v18 = vadd.f32 %v826_v17, %v1302_v39 }
 0x9ef   :  { %v885_v19 = vrot.slane %v830_v18, 6  ;;  %v881_v21 = vrot.slane %v830_v18, 5  ;;  %v867_v23 = vrot.slane %v830_v18, 1  ;;  %v889_v25 = vrot.slane %v830_v18, 7 }
 0x9f0   :  { %v871_v26 = vrot.slane %v830_v18, 2  ;;  %v875_v29 = vrot.slane %v830_v18, 3  ;;  %v879_v38 = vrot.slane %v830_v18, 4 }
 0x9f1   :  { %886 = vrot.lane.b32.xlu2 %v885_v19, %s1134_s6  ;;  %851 = vrot.lane.b32.xlu0 %v850_v20, %s1134_s6 }
 0x9f2   :  { %882 = vrot.lane.b32.xlu1 %v881_v21, %s1133_s4 }
 0x9f4   :  { %v828_v22 = vpop.f32.mrf.mxu3 }
 0x9f9   :  { %868 = vrot.lane.b32.xlu2 %v867_v23, %s1133_s4  ;;  %855 = vrot.lane.b32.xlu0 %v854_v24, %s1135_s0 }
 0x9fa   :  { %890 = vrot.lane.b32.xlu1 %v889_v25, %s1135_s0 }
 0xa01   :  { %872 = vrot.lane.b32.xlu2 %v871_v26, %s1134_s6  ;;  %841 = vrot.lane.b32.xlu0 %v840_v27, %s1135_s0 }
 0xa02   :  { %837 = vrot.lane.b32.xlu1 %v836_v28, %s1134_s6 }
 0xa09   :  { %876 = vrot.lane.b32.xlu2 %v875_v29, %s1135_s0 }
 0xa4b   :  { %v887_v30 = vpop.permute.xlu2 %886 }
 0xa53   :  { %v869_v31 = vpop.permute.xlu2 %868 }
 0xa54   :  { %v893_v44 = vsel %vm45_vm0, %v830_v18, %v869_v31 }
 0xa5b   :  { %v848_v32 = vpop.permute.xlu0 %847  ;;  %v834_v33 = vpop.permute.xlu1 %833 }
 0xa5c   :  { %v873_v37 = vpop.permute.xlu2 %872  ;;  %v863_v47 = vsel %vm45_vm0, %v844_v6, %v848_v32  ;;  %v858_v52 = vsel %vm45_vm0, %v767_v13, %v834_v33 }
 0xa5d   :  { %v894_v36 = vsel %vm859_vm3, %v893_v44, %v873_v37 }
 0xa63   :  { %v852_v34 = vpop.permute.xlu0 %851 }
 0xa64   :  { %v883_v35 = vpop.permute.xlu1 %882  ;;  %v877_v45 = vpop.permute.xlu2 %876  ;;  %v864_v46 = vsel %vm859_vm3, %v863_v47, %v852_v34 }
 0xa65   :  { %v896_v39 = vsel %vm45_vm0, %v879_v38, %v883_v35  ;;  %v895_v48 = vsel %vm861_vm4, %v894_v36, %v877_v45 }
 0xa66   :  { %v897_v41 = vsel %vm859_vm3, %v896_v39, %v887_v30  ;;  %v901_v54 = vrot.slane %v895_v48, 7 }
 0xa6b   :  { %v856_v40 = vpop.permute.xlu0 %855 }
 0xa6c   :  { %v891_v42 = vpop.permute.xlu1 %890  ;;  %v865_v49 = vsel %vm861_vm4, %v864_v46, %v856_v40 }
 0xa6d   :  { %v898_v43 = vsel %vm861_vm4, %v897_v41, %v891_v42 }
 0xa6e   :  { %v902_v62 = vrot.slane %v898_v43, 7 }
 0xa70   :  { %v907_v50 = vsel %vm905_vm5, %v865_v49, %v902_v62 }
 0xa71   :  { %v910_v56 = vrot.slane %v907_v50, 6 }
 0xa73   :  { %v842_v51 = vpop.permute.xlu0 %841 }
 0xa74   :  { %v838_v53 = vpop.permute.xlu1 %837 }
 0xa75   :  { %v860_v55 = vsel %vm859_vm3, %v858_v52, %v838_v53 }
 0xa76   :  { %v862_v57 = vsel %vm861_vm4, %v860_v55, %v842_v51 }
 0xa77   :  { %v906_v58 = vsel %vm905_vm5, %v862_v57, %v901_v54 }
 0xa78   :  { %v912_v59 = vsel %vm911_vm6, %v906_v58, %v910_v56 }
 0xa79   :  { %914 = vst [vmem:[#allocation2] sm:$0xf] %v912_v59 }
 0xa7a   :  { %925 = dma.vmem_to_hbm [thread:$0]  %s921_s8, 64, %s923_s11, [#allocation3]  }
 0xa7b   :  { %1131 = dma.done.wait [#allocation3], 64  }
 0xa7c   :  { %1132 = vsyncadd [#allocation3], 4294967232 }
 0xa7d   :  { %930 = vsyncpa [#allocation3], 1 }

</bundles_post_ra>
